<compile_context>
chip_gen: v7x
topology: tpu7x:2x2x1
jax: 0.10.0
libtpu: 0.0.40
codegen_flags: <defaults>
</compile_context>

<pallas_src>
import jax
import jax.numpy as jnp
from jax.experimental import pallas as pl
from jax.experimental.pallas import tpu as pltpu


# -----------------------------------------------------------------------------
# Kernel: fused Linear(1, E) + bias + ReLU
# -----------------------------------------------------------------------------
def age_embedding_kernel(age_ref, w_ref, b_ref, out_ref):
    """age_ref: (N, 1), w_ref: (1, E), b_ref: (1, E), out_ref: (N, E)."""
    age = age_ref[...]                     # (N, 1) f32
    w = w_ref[...]                         # (1, E) f32  (== PyTorch weight.T)
    b = b_ref[...]                         # (1, E) f32
    y = age * w + b                        # broadcast VPU FMA -> (N, E)
    out_ref[...] = jnp.maximum(y, 0.0)     # ReLU


def age_embedding(age, weight_t, bias):
    """AgeEmbedding forward.

    age:      (..., 1) float32
    weight_t: (1, E)   float32  -- PyTorch nn.Linear(1, E).weight, transposed
    bias:     (1, E)   float32  -- PyTorch nn.Linear(1, E).bias, reshaped
    returns:  (..., E) float32
    """
    E = weight_t.shape[1]
    lead = age.shape[:-1]
    n = 1
    for d in lead:
        n *= d
    age2d = age.reshape(n, 1).astype(jnp.float32)

    out = pl.pallas_call(
        age_embedding_kernel,
        out_shape=jax.ShapeDtypeStruct((n, E), jnp.float32),
        # Whole arrays resident in VMEM; no grid, no tiling needed at this size.
        in_specs=[
            pl.BlockSpec(memory_space=pltpu.MemorySpace.VMEM),
            pl.BlockSpec(memory_space=pltpu.MemorySpace.VMEM),
            pl.BlockSpec(memory_space=pltpu.MemorySpace.VMEM),
        ],
        out_specs=pl.BlockSpec(memory_space=pltpu.MemorySpace.VMEM),
    )(age2d, weight_t, bias)
    return out.reshape(*lead, E)


# -----------------------------------------------------------------------------
# Demo / self-check
# -----------------------------------------------------------------------------
if __name__ == "__main__":
    B, E = 2, 32   # batch, embedding_dim

    key = jax.random.PRNGKey(0)
    k_age, k_w, k_b = jax.random.split(key, 3)

    age = jax.random.normal(k_age, (B, 1), jnp.float32)
    # Parameters stored in kernel layout; they correspond to PyTorch
    # nn.Linear(1, E).weight.T (shape (1, E)) and .bias (reshaped to (1, E)).
    # Real PyTorch weights of shape (E, 1) / (E,) would need a transpose/reshape.
    weight_t = (0.5 * jax.random.normal(k_w, (1, E))).astype(jnp.float32)
    bias = (0.1 * jax.random.normal(k_b, (1, E))).astype(jnp.float32)

    out = age_embedding(age, weight_t, bias)
    jax.block_until_ready(out)

    # Pure-JAX reference: Linear(1, E) followed by ReLU.
    ref = jnp.maximum(age @ weight_t + bias, 0.0)

    assert out.shape == (B, E)
    assert bool(jnp.allclose(out, ref, atol=1e-6, rtol=1e-6))
    print("KERNEL_OK")
</pallas_src>

<mosaic_0001>
module attributes {stable_mosaic.version = 11 : i64} {
  func.func @age_embedding_kernel(%arg0: memref<2x1xf32, #tpu.memory_space<vmem>>, %arg1: memref<1x32xf32, #tpu.memory_space<vmem>>, %arg2: memref<1x32xf32, #tpu.memory_space<vmem>>, %arg3: memref<2x32xf32, #tpu.memory_space<vmem>>) attributes {dimension_semantics = [], scalar_prefetch = 0 : i64, scratch_operands = 0 : i64, tpu.core_type = #tpu.core_type<tc>} {
    %c0 = arith.constant 0 : index
    %c0_0 = arith.constant 0 : index
    %0 = vector.load %arg0[%c0, %c0_0] : memref<2x1xf32, #tpu.memory_space<vmem>>, vector<2x1xf32>
    %c0_1 = arith.constant 0 : index
    %c0_2 = arith.constant 0 : index
    %1 = vector.load %arg1[%c0_1, %c0_2] : memref<1x32xf32, #tpu.memory_space<vmem>>, vector<1x32xf32>
    %c0_3 = arith.constant 0 : index
    %c0_4 = arith.constant 0 : index
    %2 = vector.load %arg2[%c0_3, %c0_4] : memref<1x32xf32, #tpu.memory_space<vmem>>, vector<1x32xf32>
    %3 = vector.broadcast %0 : vector<2x1xf32> to vector<2x32xf32>
    %4 = vector.broadcast %1 : vector<1x32xf32> to vector<2x32xf32>
    %5 = arith.mulf %3, %4 : vector<2x32xf32>
    %6 = vector.broadcast %2 : vector<1x32xf32> to vector<2x32xf32>
    %7 = arith.addf %5, %6 : vector<2x32xf32>
    %cst = arith.constant 0.000000e+00 : f32
    %8 = vector.broadcast %cst : f32 to vector<2x32xf32>
    %9 = arith.maximumf %7, %8 : vector<2x32xf32>
    %c0_5 = arith.constant 0 : index
    %c0_6 = arith.constant 0 : index
    %10 = vector.load %arg3[%c0_5, %c0_6] : memref<2x32xf32, #tpu.memory_space<vmem>>, vector<2x32xf32>
    tpu.vector_store %arg3[%c0_5, %c0_6], %9 {strides = array<i32>} : memref<2x32xf32, #tpu.memory_space<vmem>>, vector<2x32xf32>,
    return
  }
}

</mosaic_0001>

<bundles_post_ra>
// kernel: tpu_custom_call.1
= control target key start
LH: loop header
LB: loop body
LE: loop exit
PB: predicated region body
PF: predicated region fallthrough
CT: control target
= control target key end

     0   :  { %v83_v1 = vmov 0   ;;  %s126_s0 = inlined_call_operand.vmem [shape: f32[2,1], index: 0, kind: input, shape index: {}]   ;;  %s127_s1 = inlined_call_operand.vmem [shape: f32[1,32], index: 1, kind: input, shape index: {}]   ;;  %s128_s2 = inlined_call_operand.vmem [shape: f32[1,32], index: 2, kind: input, shape index: {}]   ;;  %s129_s3 = inlined_call_operand.hbm [shape: f32[2,32], index: 3, kind: output, shape index: {}]  }
   0x1   :  { %v15_v0 = vld [vmem:[%s126_s0] sm:$0x3]  ;;  %58 = vset.pattern.permute.xlu0 %v83_v1 }
   0x2   :  { %8 = vsyncpa [#allocation3], 0  ;;  %20 = vperm.xlu0 %58, %v15_v0   ;;  %v54_v2 = vld [vmem:[%s127_s1] ss:$0 sm:$0xff]  ;;  %s84_s18 = smov [#allocation2]   ;;  %vm38_vm0 = vcmask 254976  }
   0x3   :  { %v55_v3 = vld [vmem:[%s128_s2] ss:$0 sm:$0xff]  ;;  %s46_s19 = sshll.u32 %s84_s18, 4  ;;  %s47_s19 = int_to_ptr.vmem [resolvable:$true] %s46_s19 }
   0x4   :  { %s59_s0 = scalar_lea.vmem %s47_s19, 32  ;;  %p64_p1 = scmp.lt.s32.totalorder %s47_s19, %s47_s19 }
   0x5   :  { %p60_p0 = scmp.ne.s32.totalorder %s47_s19, %s59_s0  ;;  %p65_p2 = scmp.lt.s32.totalorder %s59_s0, %s59_s0 }
   0x7   :  { %p66_p3 = por %p65_p2, %p64_p1 }
   0x9   :  { %p67_p4 = pnand %p66_p3, %p60_p0 }
  0x81   :  { %v21_v4 = vpop.permute.xlu0 %20 }
  0x82   :  { %v29_v5 = vmul.f32 %v54_v2, %v21_v4 }
  0x84   :  { %v36_v6 = vadd.f32 %v55_v3, %v29_v5 }
  0x86   :  { %v37_v7 = vmax.f32 %v36_v6, 0.0 }
  0x88   :  { %39 = vst.msk [vmem:[#allocation2] sm:$0x3] %vm38_vm0, %v37_v7 }
  0x89   :  { %70 = shalt.err (!%p67_p4)
}
  0x8a   :  { %s71_s2 = scalar_lea.hbm %s129_s3, 32 }
  0x8b   :  { %p72_p5 = scmp.ne.s32.totalorder %s129_s3, %s71_s2  ;;  %p75_p6 = scmp.lt.u32.totalorder %s71_s2, %s129_s3 }
  0x8d   :  { %p77_p7 = pnand %p75_p6, %p72_p5 }
  0x8f   :  { %80 = shalt.err (!%p77_p7)
}
  0x90   :  { %49 = dma.vmem_to_hbm [thread:$0]  %s47_s19, 32, %s129_s3, [#allocation3]  }
  0x91   :  { %81 = dma.done.wait [#allocation3], 32  }
  0x92   :  { %82 = vsyncadd [#allocation3], 4294967264 }
  0x93   :  { %53 = vsyncpa [#allocation3], 1 }

</bundles_post_ra>
